<compile_context>
chip_gen: v7x
topology: tpu7x:2x2x1
jax: 0.10.0
libtpu: 0.0.40
codegen_flags: <defaults>
</compile_context>

<pallas_src>
import jax
import jax.numpy as jnp
from jax.experimental import pallas as pl
from jax.experimental.pallas import tpu as pltpu

HIDDEN = 100          # logical hidden size (matches the PyTorch module)
HIDDEN_PAD = 128      # lane-aligned padded hidden size
FLEN = 10
FCOUNT = 4
VOCAB = 8
INPUT_SIZE = FCOUNT * FLEN * VOCAB  # 320
BATCH = 8


def mlp_kernel(x_ref, w1_ref, b1_ref, w2_ref, b2_ref,
               w3_ref, b3_ref, w4_ref, b4_ref, o_ref):
    # In-kernel f32 -> bf16 cast of the input tile (cheap VPU packs; avoids a
    # separate padded/cast copy of x in HBM).
    x = x_ref[...].astype(jnp.bfloat16)
    # Layers 1-3: bf16 MXU matmuls, f32 accumulation, f32 biases/activations.
    h = jnp.dot(x, w1_ref[...], preferred_element_type=jnp.float32) + b1_ref[...]
    h = jnp.maximum(h, 0.0)                                   # ReLU
    h = jnp.dot(h.astype(jnp.bfloat16), w2_ref[...],
                preferred_element_type=jnp.float32) + b2_ref[...]
    h = jnp.tanh(h)                                           # Tanh
    h = jnp.dot(h.astype(jnp.bfloat16), w3_ref[...],
                preferred_element_type=jnp.float32) + b3_ref[...]
    h = jnp.maximum(h, 0.0)                                   # ReLU
    # Layer 4 (out_features == 1): VPU multiply + cross-lane reduce instead of
    # a 1-column MXU matmul. w4 is a (1, HIDDEN_PAD) f32 row; b4 an SMEM scalar.
    z = jnp.sum(h * w4_ref[...], axis=-1, keepdims=True) + b4_ref[0, 0]
    # Compact (tb, 1) store: output array is (b_pad, 1).
    o_ref[...] = jax.nn.sigmoid(z)


def make_params(key):
    """Deterministic PyTorch-style init: U(-1/sqrt(fan_in), 1/sqrt(fan_in)).

    Logical shapes: weights are (in_features, out_features) so the forward is
    x @ W + b (equivalent to PyTorch's x @ W.T + b with its (out, in) layout).
    """
    dims = [(INPUT_SIZE, HIDDEN), (HIDDEN, HIDDEN), (HIDDEN, HIDDEN), (HIDDEN, 1)]
    params = []
    for (fan_in, fan_out) in dims:
        key, kw, kb = jax.random.split(key, 3)
        bound = 1.0 / jnp.sqrt(jnp.float32(fan_in))
        w = jax.random.uniform(kw, (fan_in, fan_out), jnp.float32, -bound, bound)
        b = jax.random.uniform(kb, (1, fan_out), jnp.float32, -bound, bound)
        params.extend([w, b])
    return params


def pad_params(params):
    """One-time pad (100 -> 128) + bf16 cast of the weights for the kernel.

    Zero-padded rows/cols and biases keep the padded hidden lanes inert:
    ReLU(0)=0, tanh(0)=0, and w4's padded lanes are 0 in the final reduce.
    """
    w1, b1, w2, b2, w3, b3, w4, b4 = params
    H, HP, D = HIDDEN, HIDDEN_PAD, INPUT_SIZE
    w1p = jnp.zeros((D, HP), jnp.bfloat16).at[:, :H].set(w1.astype(jnp.bfloat16))
    b1p = jnp.zeros((1, HP), jnp.float32).at[:, :H].set(b1)
    w2p = jnp.zeros((HP, HP), jnp.bfloat16).at[:H, :H].set(w2.astype(jnp.bfloat16))
    b2p = jnp.zeros((1, HP), jnp.float32).at[:, :H].set(b2)
    w3p = jnp.zeros((HP, HP), jnp.bfloat16).at[:H, :H].set(w3.astype(jnp.bfloat16))
    b3p = jnp.zeros((1, HP), jnp.float32).at[:, :H].set(b3)
    w4p = jnp.zeros((1, HP), jnp.float32).at[:, :H].set(w4.reshape(1, H))
    b4p = b4.reshape(1, 1).astype(jnp.float32)
    return (w1p, b1p, w2p, b2p, w3p, b3p, w4p, b4p)


def _round_up(n, m):
    return (n + m - 1) // m * m


def net_forward(x, kernel_params):
    """Run the Pallas kernel; returns (B, 1) float32 probabilities.

    `kernel_params` is the output of pad_params() (padded + pre-cast once).
    """
    w1p, b1p, w2p, b2p, w3p, b3p, w4p, b4p = kernel_params
    B, D = x.shape

    # Batch tiling: sublane-aligned rows, up to 1024 rows per step, but keep
    # >= 2 grid steps once b_pad >= 16 so v7x's two TensorCores both get work.
    b_pad = _round_up(max(B, 1), 8)
    if b_pad >= 16:
        tb = min(1024, _round_up((b_pad + 1) // 2, 8))
    else:
        tb = b_pad
    b_pad = _round_up(b_pad, tb)

    # Only pad x (with zero rows, f32 — cast happens in-kernel) if B is not a
    # tile multiple; padded rows produce finite garbage and are sliced off.
    xk = x if b_pad == B else jnp.zeros((b_pad, D), x.dtype).at[:B].set(x)

    def tile_spec(shape):       # batch-tiled arrays (x, out)
        return pl.BlockSpec(shape, lambda i: (i, 0))

    def resident_spec(shape):   # weights/biases: constant index_map -> stays
        return pl.BlockSpec(shape, lambda i: (0, 0))  # resident, no per-step DMA

    out = pl.pallas_call(
        mlp_kernel,
        out_shape=jax.ShapeDtypeStruct((b_pad, 1), jnp.float32),
        grid=(b_pad // tb,),
        in_specs=[
            tile_spec((tb, D)),
            resident_spec(w1p.shape), resident_spec(b1p.shape),
            resident_spec(w2p.shape), resident_spec(b2p.shape),
            resident_spec(w3p.shape), resident_spec(b3p.shape),
            resident_spec(w4p.shape),
            pl.BlockSpec(memory_space=pltpu.MemorySpace.SMEM),   # b4 scalar
        ],
        out_specs=tile_spec((tb, 1)),
        compiler_params=pltpu.CompilerParams(
            dimension_semantics=("parallel",)),
    )(xk, w1p, b1p, w2p, b2p, w3p, b3p, w4p, b4p)

    return out[:B] if b_pad != B else out


def net_forward_ref(x, params):
    """Pure-JAX f32 reference for correctness check."""
    w1, b1, w2, b2, w3, b3, w4, b4 = params
    h = jnp.maximum(x @ w1 + b1, 0.0)
    h = jnp.tanh(h @ w2 + b2)
    h = jnp.maximum(h @ w3 + b3, 0.0)
    return jax.nn.sigmoid(h @ w4 + b4)


if __name__ == "__main__":
    key = jax.random.PRNGKey(0)
    key, kx = jax.random.split(key)
    x = jax.random.normal(kx, (BATCH, INPUT_SIZE), jnp.float32)
    params = make_params(key)
    kernel_params = pad_params(params)   # one-time pad/cast, outside the hot path

    out = net_forward(x, kernel_params)
    out = jax.block_until_ready(out)

    ref = net_forward_ref(x, params)
    assert out.shape == (BATCH, 1)
    # bf16 MXU operands -> compare against the f32 reference with a looser
    # absolute tolerance (outputs are sigmoid probabilities in [0, 1]).
    assert jnp.allclose(out, ref, atol=2e-2, rtol=0.0), (
        f"max abs err {jnp.max(jnp.abs(out - ref))}")

    print("KERNEL_OK")
</pallas_src>

<mosaic_0001>
module attributes {stable_mosaic.version = 11 : i64} {
  func.func @mlp_kernel(%arg0: i32, %arg1: memref<8x320xf32, #tpu.memory_space<vmem>>, %arg2: memref<320x128xbf16, #tpu.memory_space<vmem>>, %arg3: memref<1x128xf32, #tpu.memory_space<vmem>>, %arg4: memref<128x128xbf16, #tpu.memory_space<vmem>>, %arg5: memref<1x128xf32, #tpu.memory_space<vmem>>, %arg6: memref<128x128xbf16, #tpu.memory_space<vmem>>, %arg7: memref<1x128xf32, #tpu.memory_space<vmem>>, %arg8: memref<1x128xf32, #tpu.memory_space<vmem>>, %arg9: memref<1x1xf32, #tpu.memory_space<smem>>, %arg10: memref<8x1xf32, #tpu.memory_space<vmem>>) attributes {dimension_semantics = [#tpu.dimension_semantics<parallel>], iteration_bounds = array<i64: 1>, scalar_prefetch = 0 : i64, scratch_operands = 0 : i64, tpu.core_type = #tpu.core_type<tc>, window_params = [{transform_indices = @transform_0, window_bounds = array<i64: 8, 320>}, {pipeline_mode = #tpu.pipeline_mode<synchronous>, transform_indices = @transform_1, window_bounds = array<i64: 320, 128>}, {pipeline_mode = #tpu.pipeline_mode<synchronous>, transform_indices = @transform_2, window_bounds = array<i64: 1, 128>}, {pipeline_mode = #tpu.pipeline_mode<synchronous>, transform_indices = @transform_3, window_bounds = array<i64: 128, 128>}, {pipeline_mode = #tpu.pipeline_mode<synchronous>, transform_indices = @transform_4, window_bounds = array<i64: 1, 128>}, {pipeline_mode = #tpu.pipeline_mode<synchronous>, transform_indices = @transform_5, window_bounds = array<i64: 128, 128>}, {pipeline_mode = #tpu.pipeline_mode<synchronous>, transform_indices = @transform_6, window_bounds = array<i64: 1, 128>}, {pipeline_mode = #tpu.pipeline_mode<synchronous>, transform_indices = @transform_7, window_bounds = array<i64: 1, 128>}, {transform_indices = @transform_8, window_bounds = array<i64: 1, 1>}, {transform_indices = @transform_9, window_bounds = array<i64: 8, 1>}]} {
    %c0 = arith.constant 0 : index
    %c0_0 = arith.constant 0 : index
    %0 = vector.load %arg1[%c0, %c0_0] : memref<8x320xf32, #tpu.memory_space<vmem>>, vector<8x320xf32>
    %1 = arith.truncf %0 : vector<8x320xf32> to vector<8x320xbf16>
    %c0_1 = arith.constant 0 : index
    %c0_2 = arith.constant 0 : index
    %2 = vector.load %arg2[%c0_1, %c0_2] : memref<320x128xbf16, #tpu.memory_space<vmem>>, vector<320x128xbf16>
    %cst = arith.constant dense<0.000000e+00> : vector<8x128xf32>
    %3 = tpu.matmul %1, %2, %cst {dimension_numbers = #tpu.dot_dimension_numbers<[1], [0], [0], [1], [0, 0, 1, 1], [], []>} : vector<8x320xbf16>, vector<320x128xbf16>, vector<8x128xf32> -> vector<8x128xf32>
    %c0_3 = arith.constant 0 : index
    %c0_4 = arith.constant 0 : index
    %4 = vector.load %arg3[%c0_3, %c0_4] : memref<1x128xf32, #tpu.memory_space<vmem>>, vector<1x128xf32>
    %5 = vector.broadcast %4 : vector<1x128xf32> to vector<8x128xf32>
    %6 = arith.addf %3, %5 : vector<8x128xf32>
    %cst_5 = arith.constant 0.000000e+00 : f32
    %7 = vector.broadcast %cst_5 : f32 to vector<8x128xf32>
    %8 = arith.maximumf %6, %7 : vector<8x128xf32>
    %9 = arith.truncf %8 : vector<8x128xf32> to vector<8x128xbf16>
    %c0_6 = arith.constant 0 : index
    %c0_7 = arith.constant 0 : index
    %10 = vector.load %arg4[%c0_6, %c0_7] : memref<128x128xbf16, #tpu.memory_space<vmem>>, vector<128x128xbf16>
    %cst_8 = arith.constant dense<0.000000e+00> : vector<8x128xf32>
    %11 = tpu.matmul %9, %10, %cst_8 {dimension_numbers = #tpu.dot_dimension_numbers<[1], [0], [0], [1], [0, 0, 1, 1], [], []>} : vector<8x128xbf16>, vector<128x128xbf16>, vector<8x128xf32> -> vector<8x128xf32>
    %c0_9 = arith.constant 0 : index
    %c0_10 = arith.constant 0 : index
    %12 = vector.load %arg5[%c0_9, %c0_10] : memref<1x128xf32, #tpu.memory_space<vmem>>, vector<1x128xf32>
    %13 = vector.broadcast %12 : vector<1x128xf32> to vector<8x128xf32>
    %14 = arith.addf %11, %13 : vector<8x128xf32>
    %15 = math.tanh %14 : vector<8x128xf32>
    %16 = arith.truncf %15 : vector<8x128xf32> to vector<8x128xbf16>
    %c0_11 = arith.constant 0 : index
    %c0_12 = arith.constant 0 : index
    %17 = vector.load %arg6[%c0_11, %c0_12] : memref<128x128xbf16, #tpu.memory_space<vmem>>, vector<128x128xbf16>
    %cst_13 = arith.constant dense<0.000000e+00> : vector<8x128xf32>
    %18 = tpu.matmul %16, %17, %cst_13 {dimension_numbers = #tpu.dot_dimension_numbers<[1], [0], [0], [1], [0, 0, 1, 1], [], []>} : vector<8x128xbf16>, vector<128x128xbf16>, vector<8x128xf32> -> vector<8x128xf32>
    %c0_14 = arith.constant 0 : index
    %c0_15 = arith.constant 0 : index
    %19 = vector.load %arg7[%c0_14, %c0_15] : memref<1x128xf32, #tpu.memory_space<vmem>>, vector<1x128xf32>
    %20 = vector.broadcast %19 : vector<1x128xf32> to vector<8x128xf32>
    %21 = arith.addf %18, %20 : vector<8x128xf32>
    %cst_16 = arith.constant 0.000000e+00 : f32
    %22 = vector.broadcast %cst_16 : f32 to vector<8x128xf32>
    %23 = arith.maximumf %21, %22 : vector<8x128xf32>
    %c0_17 = arith.constant 0 : index
    %c0_18 = arith.constant 0 : index
    %24 = vector.load %arg8[%c0_17, %c0_18] : memref<1x128xf32, #tpu.memory_space<vmem>>, vector<1x128xf32>
    %25 = vector.broadcast %24 : vector<1x128xf32> to vector<8x128xf32>
    %26 = arith.mulf %23, %25 : vector<8x128xf32>
    %cst_19 = arith.constant dense<0.000000e+00> : vector<8xf32>
    %27 = vector.multi_reduction <add>, %26, %cst_19 [1] : vector<8x128xf32> to vector<8xf32>
    %28 = vector.shape_cast %27 : vector<8xf32> to vector<8x1xf32>
    %c0_20 = arith.constant 0 : index
    %c0_21 = arith.constant 0 : index
    %29 = memref.load %arg9[%c0_20, %c0_21] : memref<1x1xf32, #tpu.memory_space<smem>>
    %30 = vector.broadcast %29 : f32 to vector<8x1xf32>
    %31 = arith.addf %28, %30 : vector<8x1xf32>
    %32 = arith.negf %31 : vector<8x1xf32>
    %33 = math.exp %32 : vector<8x1xf32>
    %cst_22 = arith.constant 1.000000e+00 : f32
    %34 = vector.broadcast %cst_22 : f32 to vector<8x1xf32>
    %35 = arith.addf %34, %33 : vector<8x1xf32>
    %36 = arith.divf %34, %35 : vector<8x1xf32>
    %c0_23 = arith.constant 0 : index
    %c0_24 = arith.constant 0 : index
    %37 = vector.load %arg10[%c0_23, %c0_24] : memref<8x1xf32, #tpu.memory_space<vmem>>, vector<8x1xf32>
    tpu.vector_store %arg10[%c0_23, %c0_24], %36 {strides = array<i32>} : memref<8x1xf32, #tpu.memory_space<vmem>>, vector<8x1xf32>,
    return
  }
  func.func @transform_0(%arg0: i32) -> (i32, i32) {
    %c0_i32 = arith.constant 0 : i32
    %c0_i32_0 = arith.constant 0 : i32
    return %arg0, %c0_i32 : i32, i32
  }
  func.func @transform_1(%arg0: i32) -> (i32, i32) {
    %c0_i32 = arith.constant 0 : i32
    %c0_i32_0 = arith.constant 0 : i32
    %c0_i32_1 = arith.constant 0 : i32
    return %c0_i32, %c0_i32_0 : i32, i32
  }
  func.func @transform_2(%arg0: i32) -> (i32, i32) {
    %c0_i32 = arith.constant 0 : i32
    %c0_i32_0 = arith.constant 0 : i32
    %c0_i32_1 = arith.constant 0 : i32
    return %c0_i32, %c0_i32_0 : i32, i32
  }
  func.func @transform_3(%arg0: i32) -> (i32, i32) {
    %c0_i32 = arith.constant 0 : i32
    %c0_i32_0 = arith.constant 0 : i32
    %c0_i32_1 = arith.constant 0 : i32
    return %c0_i32, %c0_i32_0 : i32, i32
  }
  func.func @transform_4(%arg0: i32) -> (i32, i32) {
    %c0_i32 = arith.constant 0 : i32
    %c0_i32_0 = arith.constant 0 : i32
    %c0_i32_1 = arith.constant 0 : i32
    return %c0_i32, %c0_i32_0 : i32, i32
  }
  func.func @transform_5(%arg0: i32) -> (i32, i32) {
    %c0_i32 = arith.constant 0 : i32
    %c0_i32_0 = arith.constant 0 : i32
    %c0_i32_1 = arith.constant 0 : i32
    return %c0_i32, %c0_i32_0 : i32, i32
  }
  func.func @transform_6(%arg0: i32) -> (i32, i32) {
    %c0_i32 = arith.constant 0 : i32
    %c0_i32_0 = arith.constant 0 : i32
    %c0_i32_1 = arith.constant 0 : i32
    return %c0_i32, %c0_i32_0 : i32, i32
  }
  func.func @transform_7(%arg0: i32) -> (i32, i32) {
    %c0_i32 = arith.constant 0 : i32
    %c0_i32_0 = arith.constant 0 : i32
    %c0_i32_1 = arith.constant 0 : i32
    return %c0_i32, %c0_i32_0 : i32, i32
  }
  func.func @transform_8(%arg0: i32) -> (i32, i32) {
    %c0_i32 = arith.constant 0 : i32
    %c0_i32_0 = arith.constant 0 : i32
    %c0_i32_1 = arith.constant 0 : i32
    return %c0_i32, %c0_i32_0 : i32, i32
  }
  func.func @transform_9(%arg0: i32) -> (i32, i32) {
    %c0_i32 = arith.constant 0 : i32
    %c0_i32_0 = arith.constant 0 : i32
    return %arg0, %c0_i32 : i32, i32
  }
}

</mosaic_0001>

<bundles_post_ra>
// kernel: tpu_custom_call.1
= control target key start
LH: loop header
LB: loop body
LE: loop exit
PB: predicated region body
PF: predicated region fallthrough
CT: control target
= control target key end

     0   :  { %15 = vsyncpa [#allocation4], 0  ;;  %s1041_s0 = inlined_call_operand.hbm [shape: f32[8,320], index: 0, kind: input, shape index: {}]   ;;  %s1042_s1 = inlined_call_operand.hbm [shape: bf16[320,128], index: 1, kind: input, shape index: {}]   ;;  %s1043_s2 = inlined_call_operand.vmem [shape: f32[1,128], index: 2, kind: input, shape index: {}]   ;;  %s1044_s3 = inlined_call_operand.hbm [shape: bf16[128,128], index: 3, kind: input, shape index: {}]   ;;  %s1045_s4 = inlined_call_operand.vmem [shape: f32[1,128], index: 4, kind: input, shape index: {}]   ;;  %s1046_s5 = inlined_call_operand.hbm [shape: bf16[128,128], index: 5, kind: input, shape index: {}]   ;;  %s1047_s6 = inlined_call_operand.vmem [shape: f32[1,128], index: 6, kind: input, shape index: {}]   ;;  %s1048_s7 = inlined_call_operand.vmem [shape: f32[1,128], index: 7, kind: input, shape index: {}]   ;;  %s1049_s8 = inlined_call_operand.<no memory space> [shape: f32[1,1], index: 8, kind: input, shape index: {}]   ;;  %s1050_s9 = inlined_call_operand.vmem [shape: f32[8,1], index: 9, kind: output, shape index: {}]  }
   0x1   :  { %16 = vsyncpa [#allocation6], 0 }
   0x2   :  { %17 = vsyncpa [#allocation9], 0  ;;  %s882_s30 = smov [#allocation5]   ;;  %s788_s13 = scalar_lea.hbm %s1042_s1, 2560 }
   0x3   :  { %s33_s10 = sshll.u32 %s882_s30, 4  ;;  %p789_p0 = scmp.ne.s32.totalorder %s1042_s1, %s788_s13  ;;  %s34_s10 = int_to_ptr.vmem [resolvable:$true] %s33_s10 }
   0x4   :  { %p792_p1 = scmp.lt.u32.totalorder %s788_s13, %s1042_s1 }
   0x6   :  { %p794_p2 = pnand %p792_p1, %p789_p0 }
   0x8   :  { %797 = shalt.err (!%p794_p2)
}
   0x9   :  { %s798_s18 = scalar_lea.vmem %s34_s10, 2560  ;;  %p803_p4 = scmp.lt.s32.totalorder %s34_s10, %s34_s10 }
   0xa   :  { %p799_p3 = scmp.ne.s32.totalorder %s34_s10, %s798_s18  ;;  %p804_p5 = scmp.lt.s32.totalorder %s798_s18, %s798_s18 }
   0xc   :  { %p805_p6 = por %p804_p5, %p803_p4 }
   0xe   :  { %p806_p7 = pnand %p805_p6, %p799_p3 }
  0x10   :  { %809 = shalt.err (!%p806_p7)
}
  0x11   :  { %s883_s19 = smov 64   ;;  %s884_s20 = smov 4  }
  0x12   :  { %39 = dma.hbm_to_vmem [thread:$0]  %s1042_s1, 2560, %s34_s10, [#allocation6], %s883_s19, %s883_s19, %s884_s20  }
  0x13   :  { %s885_s23 = smov [#allocation3]   ;;  %s886_s25 = smov [#allocation7]  }
  0x14   :  { %s24_s24 = sshll.u32 %s885_s23, 4  ;;  %s47_s26 = sshll.u32 %s886_s25, 4  ;;  %s25_s24 = int_to_ptr.vmem [resolvable:$true] %s24_s24  ;;  %s48_s26 = int_to_ptr.vmem [resolvable:$true] %s47_s26 }
  0x15   :  { %s810_s29 = scalar_lea.hbm %s1041_s0, 384 }
  0x16   :  { %p811_p8 = scmp.ne.s32.totalorder %s1041_s0, %s810_s29  ;;  %p814_p9 = scmp.lt.u32.totalorder %s810_s29, %s1041_s0 }
  0x18   :  { %p816_p10 = pnand %p814_p9, %p811_p8 }
  0x1a   :  { %819 = shalt.err (!%p816_p10)
}
  0x1b   :  { %s820_s1 = scalar_lea.vmem %s25_s24, 384  ;;  %p825_p12 = scmp.lt.s32.totalorder %s25_s24, %s25_s24 }
  0x1c   :  { %p821_p11 = scmp.ne.s32.totalorder %s25_s24, %s820_s1  ;;  %p826_p13 = scmp.lt.s32.totalorder %s820_s1, %s820_s1 }
  0x1e   :  { %p827_p0 = por %p826_p13, %p825_p12 }
  0x20   :  { %p828_p1 = pnand %p827_p0, %p821_p11 }
  0x22   :  { %831 = shalt.err (!%p828_p1)
}
  0x23   :  { %27 = dma.hbm_to_vmem [thread:$0]  %s1041_s0, 384, %s25_s24, [#allocation4]  }
  0x24   :  { %s832_s17 = scalar_lea.hbm %s1044_s3, 1024 }
  0x25   :  { %p833_p2 = scmp.ne.s32.totalorder %s1044_s3, %s832_s17  ;;  %p836_p3 = scmp.lt.u32.totalorder %s832_s17, %s1044_s3 }
  0x27   :  { %p838_p4 = pnand %p836_p3, %p833_p2 }
  0x29   :  { %841 = shalt.err (!%p838_p4)
}
  0x2a   :  { %s842_s25 = scalar_lea.vmem %s48_s26, 1024  ;;  %p847_p6 = scmp.lt.s32.totalorder %s48_s26, %s48_s26 }
  0x2b   :  { %p843_p5 = scmp.ne.s32.totalorder %s48_s26, %s842_s25  ;;  %p848_p7 = scmp.lt.s32.totalorder %s842_s25, %s842_s25 }
  0x2d   :  { %p849_p8 = por %p848_p7, %p847_p6 }
  0x2f   :  { %p850_p9 = pnand %p849_p8, %p843_p5 }
  0x31   :  { %853 = shalt.err (!%p850_p9)
}
  0x32   :  { %53 = dma.hbm_to_vmem [thread:$0]  %s1044_s3, 1024, %s48_s26, [#allocation6], %s883_s19, %s883_s19, %s884_s20  }
  0x33   :  { %s887_s27 = smov [#allocation8]   ;;  %s854_s11 = scalar_lea.hbm %s1046_s5, 1024 }
  0x34   :  { %s61_s28 = sshll.u32 %s887_s27, 4  ;;  %p855_p10 = scmp.ne.s32.totalorder %s1046_s5, %s854_s11  ;;  %s62_s28 = int_to_ptr.vmem [resolvable:$true] %s61_s28 }
  0x35   :  { %p858_p11 = scmp.lt.u32.totalorder %s854_s11, %s1046_s5 }
  0x37   :  { %p860_p12 = pnand %p858_p11, %p855_p10 }
  0x39   :  { %863 = shalt.err (!%p860_p12)
}
  0x3a   :  { %s864_s14 = scalar_lea.vmem %s62_s28, 1024  ;;  %p869_p0 = scmp.lt.s32.totalorder %s62_s28, %s62_s28 }
  0x3b   :  { %p865_p13 = scmp.ne.s32.totalorder %s62_s28, %s864_s14  ;;  %p870_p1 = scmp.lt.s32.totalorder %s864_s14, %s864_s14 }
  0x3d   :  { %p871_p2 = por %p870_p1, %p869_p0 }
  0x3f   :  { %p872_p3 = pnand %p871_p2, %p865_p13 }
  0x41   :  { %875 = shalt.err (!%p872_p3)
}
  0x42   :  { %67 = dma.hbm_to_vmem [thread:$0]  %s1046_s5, 1024, %s62_s28, [#allocation9], %s883_s19, %s883_s19, %s884_s20  }
  0x43   :  { %876 = dma.done.wait [#allocation4], 384  }
  0x44   :  { %877 = vsyncadd [#allocation4], 4294966912 }
  0x45   :  { %878 = dma.done.wait [#allocation6], 3584  }
  0x46   :  { %879 = vsyncadd [#allocation6], 4294963712 }
  0x47   :  { %880 = dma.done.wait [#allocation9], 1024  }
  0x48   :  { %881 = vsyncadd [#allocation9], 4294966272  ;;  %v888_v0 = vmov 0.0   ;;  %vm889_vm0 = vmmov 0   ;;  %v746_v1 = vld [vmem:[#allocation5 + $0x40] sm:$0xff]   ;;  %v748_v3 = vld [vmem:[#allocation5 + $0x48] sm:$0xff]  }
  0x49   :  { %686 = vmatprep.subr.bf16.mxu1 %v888_v0  ;;  %694 = vmatprep.mubr.msk.bf16.mxu1 %vm889_vm0, %v888_v0  ;;  %v747_v2 = vld [vmem:[#allocation5] sm:$0xff]   ;;  %v749_v4 = vld [vmem:[#allocation5 + $0x8] sm:$0xff]   ;;  %v750_v5 = vld [vmem:[#allocation5 + $0x50] sm:$0xff]   ;;  %vm260_vm1 = vcmask 523264   ;;  %vm590_vm2 = vcmask 7168  }
  0x4a   :  { %641 = vmatprep.subr.bf16.mxu0 %v746_v1  ;;  %v751_v6 = vld [vmem:[#allocation5 + $0x10] sm:$0xff]   ;;  %v752_v7 = vld [vmem:[#allocation5 + $0x58] sm:$0xff]   ;;  %v756_v8 = vld [vmem:[#allocation5 + $0x80] sm:$0xff]  }
  0x4b   :  { %642 = vmatpush3.bf16.msra.mxu0 %v747_v2  ;;  %v753_v9 = vld [vmem:[#allocation5 + $0x18] sm:$0xff]   ;;  %v754_v10 = vld [vmem:[#allocation5 + $0x60] sm:$0xff]   ;;  %687 = vmatpush3.bf16.msra.mxu1 %v756_v8  ;;  %v759_v11 = vld [vmem:[#allocation5 + $0x88] sm:$0xff]  }
  0x4c   :  { %643 = vmatprep.subr.bf16.mxu0 %v748_v3  ;;  %688 = vmatprep.subr.bf16.mxu1 %v888_v0  ;;  %v755_v12 = vld [vmem:[#allocation5 + $0x20] sm:$0xff]   ;;  %v757_v13 = vld [vmem:[#allocation5 + $0x68] sm:$0xff]   ;;  %v762_v14 = vld [vmem:[#allocation5 + $0x90] sm:$0xff]  }
  0x4d   :  { %v758_v15 = vld [vmem:[#allocation5 + $0x28] sm:$0xff]   ;;  %v88_v16 = vld [vmem:[#allocation3 + $0x8] sm:$0xff]  ;;  %v765_v19 = vld [vmem:[#allocation5 + $0x98] sm:$0xff]  }
  0x4e   :  { %v760_v17 = vld [vmem:[#allocation5 + $0x70] sm:$0xff]   ;;  %v91_v18 = vpack.c.bf16 %v88_v16, %v88_v16  ;;  %v89_v20 = vld [vmem:[#allocation3 + $0x10] sm:$0xff]  ;;  %v766_v24 = vld [vmem:[#allocation7] sm:$0xff]  }
  0x4f   :  { %644 = vmatpush3.bf16.msra.mxu0 %v749_v4  ;;  %689 = vmatpush3.bf16.msra.mxu1 %v759_v11  ;;  %v761_v21 = vld [vmem:[#allocation5 + $0x30] sm:$0xff]   ;;  %v763_v22 = vld [vmem:[#allocation5 + $0x78] sm:$0xff]   ;;  %v92_v23 = vpack.c.bf16 %v89_v20, %v89_v20  ;;  %v87_v26 = vld [vmem:[#allocation3] sm:$0xff] }
  0x50   :  { %645 = vmatprep.subr.bf16.mxu0 %v750_v5  ;;  %690 = vmatprep.subr.bf16.mxu1 %v888_v0  ;;  %v764_v25 = vld [vmem:[#allocation5 + $0x38] sm:$0xff]   ;;  %v767_v27 = vld [vmem:[#allocation7 + $0x8] sm:$0xff]   ;;  %v90_v28 = vpack.c.bf16 %v87_v26, %v87_v26  ;;  %v768_v29 = vld [vmem:[#allocation7 + $0x10] sm:$0xff]  }
  0x51   :  { %296 = vmatprep.mubr.bf16.mxu0 %v91_v18  ;;  %v769_v30 = vld [vmem:[#allocation7 + $0x18] sm:$0xff]   ;;  %v770_v31 = vld [vmem:[#allocation7 + $0x20] sm:$0xff]   ;;  %v771_v32 = vld [vmem:[#allocation7 + $0x28] sm:$0xff]  }
  0x52   :  { %v772_v33 = vld [vmem:[#allocation7 + $0x30] sm:$0xff]   ;;  %v773_v34 = vld [vmem:[#allocation7 + $0x38] sm:$0xff]   ;;  %v774_v35 = vld [vmem:[#allocation8] sm:$0xff]  }
  0x53   :  { %646 = vmatpush3.bf16.msra.mxu0 %v751_v6  ;;  %691 = vmatpush3.bf16.msra.mxu1 %v762_v14  ;;  %v775_v36 = vld [vmem:[#allocation8 + $0x8] sm:$0xff]   ;;  %v776_v37 = vld [vmem:[#allocation8 + $0x10] sm:$0xff]   ;;  %v777_v38 = vld [vmem:[#allocation8 + $0x18] sm:$0xff]  }
  0x54   :  { %647 = vmatprep.subr.bf16.mxu0 %v752_v7  ;;  %692 = vmatprep.subr.bf16.mxu1 %v888_v0  ;;  %v599_v45 = vld [vmem:[%s1043_s2] ss:$0 sm:$0xff]  ;;  %v778_v53 = vld [vmem:[#allocation8 + $0x20] sm:$0xff]   ;;  %v780_v55 = vld [vmem:[#allocation8 + $0x30] sm:$0xff]  }
  0x55   :  { %v779_v54 = vld [vmem:[#allocation8 + $0x28] sm:$0xff]   ;;  %v781_v56 = vld [vmem:[#allocation8 + $0x38] sm:$0xff]  }
  0x56   :  { %v621_v57 = vld [vmem:[%s1045_s4] ss:$0 sm:$0xff] }
  0x57   :  { %648 = vmatpush3.bf16.msra.mxu0 %v753_v9  ;;  %693 = vmatpush3.bf16.msra.mxu1 %v765_v19  ;;  %v630_v2 = vld [vmem:[%s1047_s6] ss:$0 sm:$0xff] }
  0x58   :  { %649 = vmatprep.subr.bf16.mxu0 %v754_v10  ;;  %698 = vmatprep.subr.bf16.mxu1 %v888_v0  ;;  %v639_v6 = vld [vmem:[%s1048_s7] ss:$0 sm:$0xff]  ;;  %v582_v10 = vstv %s1049_s8 }
  0x5a   :  { %695 = vmatmul.mubr.msk.bf16.vlgmr.msra.gmra.mrb[0].mxu1 %vm260_vm1, %v92_v23 }
  0x5b   :  { %650 = vmatpush3.bf16.msra.mxu0 %v755_v12  ;;  %699 = vmatpush3.bf16.msra.mxu1 %v766_v24 }
  0x5c   :  { %651 = vmatprep.subr.bf16.mxu0 %v757_v13  ;;  %700 = vmatprep.subr.bf16.mxu1 %v888_v0 }
  0x5d   :  { %714 = vmatprep.mubr.msk.bf16.mxu1 %vm889_vm0, %v888_v0 }
  0x5f   :  { %652 = vmatpush3.bf16.msra.mxu0 %v758_v15  ;;  %701 = vmatpush3.bf16.msra.mxu1 %v767_v27 }
  0x60   :  { %653 = vmatprep.subr.bf16.mxu0 %v760_v17  ;;  %702 = vmatprep.subr.bf16.mxu1 %v888_v0 }
  0x63   :  { %654 = vmatpush3.bf16.msra.mxu0 %v761_v21  ;;  %703 = vmatpush3.bf16.msra.mxu1 %v768_v29 }
  0x64   :  { %655 = vmatprep.subr.bf16.mxu0 %v763_v22  ;;  %704 = vmatprep.subr.bf16.mxu1 %v888_v0 }
  0x67   :  { %656 = vmatpush3.bf16.msra.mxu0 %v764_v25  ;;  %705 = vmatpush3.bf16.msra.mxu1 %v769_v30 }
  0x68   :  { %718 = vmatprep.subr.bf16.mxu0 %v888_v0  ;;  %706 = vmatprep.subr.bf16.mxu1 %v888_v0 }
  0x6a   :  { %297 = vmatmul.mubr.bf16.vlgmr.msra.gmra.mrb[0].mxu0 %v90_v28 }
  0x6b   :  { %734 = vmatprep.mubr.msk.bf16.mxu0 %vm889_vm0, %v888_v0  ;;  %707 = vmatpush3.bf16.msra.mxu1 %v770_v31 }
  0x6c   :  { %708 = vmatprep.subr.bf16.mxu1 %v888_v0  ;;  %719 = vmatpush3.bf16.msra.mxu0 %v774_v35 }
  0x6d   :  { %720 = vmatprep.subr.bf16.mxu0 %v888_v0 }
  0x6f   :  { %709 = vmatpush3.bf16.msra.mxu1 %v771_v32 }
  0x70   :  { %710 = vmatprep.subr.bf16.mxu1 %v888_v0  ;;  %721 = vmatpush3.bf16.msra.mxu0 %v775_v36 }
  0x71   :  { %722 = vmatprep.subr.bf16.mxu0 %v888_v0 }
  0x73   :  { %711 = vmatpush3.bf16.msra.mxu1 %v772_v33 }
  0x74   :  { %712 = vmatprep.subr.bf16.mxu1 %v888_v0  ;;  %723 = vmatpush3.bf16.msra.mxu0 %v776_v37 }
  0x75   :  { %724 = vmatprep.subr.bf16.mxu0 %v888_v0 }
  0x77   :  { %713 = vmatpush3.bf16.msra.mxu1 %v773_v34 }
  0x78   :  { %725 = vmatpush3.bf16.msra.mxu0 %v777_v38 }
  0x79   :  { %726 = vmatprep.subr.bf16.mxu0 %v888_v0 }
  0x7c   :  { %727 = vmatpush3.bf16.msra.mxu0 %v778_v53 }
  0x7d   :  { %728 = vmatprep.subr.bf16.mxu0 %v888_v0 }
  0x80   :  { %729 = vmatpush3.bf16.msra.mxu0 %v779_v54 }
  0x81   :  { %730 = vmatprep.subr.bf16.mxu0 %v888_v0 }
  0x84   :  { %731 = vmatpush3.bf16.msra.mxu0 %v780_v55 }
  0x85   :  { %732 = vmatprep.subr.bf16.mxu0 %v888_v0 }
  0x88   :  { %733 = vmatpush3.bf16.msra.mxu0 %v781_v56 }
 0x12d   :  { %v338_v39 = vpop.f32.mrb[0].mxu1 }
 0x12e   :  { %v696_v40 = vpop.f32.mrb[1].mxu1 }
 0x12f   :  { %v341_v41 = vpop.f32.mrb[2].mxu1 }
 0x130   :  { %v697_v42 = vpop.f32.mrb[3].mxu1 }
 0x13d   :  { %v657_v43 = vpop.f32.mrb[0].mxu0 }
 0x13e   :  { %v658_v44 = vpop.f32.mrb[1].mxu0 }
 0x13f   :  { %v659_v46 = vadd.f32 %v658_v44, %v657_v43  ;;  %v660_v47 = vpop.f32.mrb[2].mxu0 }
 0x140   :  { %v661_v48 = vpop.f32.mrb[3].mxu0 }
 0x141   :  { %v299_v49 = vadd.f32 %v659_v46, %v599_v45 }
 0x143   :  { %v339_v50 = vadd.f32 %v338_v39, %v299_v49 }
 0x145   :  { %v344_v51 = vmax.f32 %v339_v50, 0.0 }
 0x147   :  { %v345_v52 = vpack.c.bf16 %v344_v51, %v344_v51 }
 0x149   :  { %715 = vmatmul.mubr.bf16.vlgmr.msra.gmra.mrb[4].mxu1 %v345_v52 }
 0x21c   :  { %v451_v58 = vpop.f32.mrb[4].mxu1 }
 0x21d   :  { %v452_v59 = vadd.f32 %v621_v57, %v451_v58  ;;  %v716_v60 = vpop.f32.mrb[5].mxu1 }
 0x21e   :  { %v454_v61 = vpop.f32.mrb[6].mxu1 }
 0x21f   :  { %782 = vtanh.f32 %v452_v59  ;;  %v717_v62 = vpop.f32.mrb[7].mxu1 }
 0x229   :  { %v783_v63 = vpop.eup %782 }
 0x22a   :  { %v458_v1 = vpack.c.bf16 %v783_v63, %v783_v63 }
 0x22c   :  { %735 = vmatmul.mubr.bf16.vlgmr.msra.gmra.mrb[4].mxu0 %v458_v1 }
 0x2ff   :  { %v564_v0 = vpop.f32.mrb[4].mxu0 }
 0x300   :  { %v565_v3 = vadd.f32 %v630_v2, %v564_v0  ;;  %v736_v4 = vpop.f32.mrb[5].mxu0 }
 0x301   :  { %v567_v5 = vpop.f32.mrb[6].mxu0 }
 0x302   :  { %v570_v7 = vmax.f32 %v565_v3, 0.0  ;;  %v737_v8 = vpop.f32.mrb[7].mxu0 }
 0x304   :  { %v578_v9 = vmul.f32 %v639_v6, %v570_v7 }
 0x306   :  { %579 = vadd.xlane.f32.xlu0 %v578_v9 }
 0x393   :  { %v580_v11 = vpop.xlane.xlu0 %579 }
 0x394   :  { %v583_v12 = vadd.f32 %v582_v10, %v580_v11 }
 0x396   :  { %v640_v13 = vmul.f32 -1.442695, %v583_v12 }
 0x398   :  { %784 = vpow2.f32 %v640_v13 }
 0x3a2   :  { %v785_v14 = vpop.eup %784 }
 0x3a3   :  { %v587_v15 = vadd.f32 1.0, %v785_v14 }
 0x3a5   :  { %786 = vrcp.f32 %v587_v15 }
 0x3af   :  { %v787_v16 = vpop.eup %786 }
 0x3b0   :  { %591 = vst.msk [vmem:[%s1050_s9] sm:$0xff] %vm590_vm2, %v787_v16 }
 0x3b1   :  { %596 = vsyncpa [#allocation4], 1 }
 0x3b2   :  { %597 = vsyncpa [#allocation6], 1 }
 0x3b3   :  { %598 = vsyncpa [#allocation9], 1 }

</bundles_post_ra>
